<compile_context>
chip_gen: v7x
topology: tpu7x:2x2x1
jax: 0.10.0
libtpu: 0.0.40
codegen_flags: <defaults>
</compile_context>

<pallas_src>
import math
import functools

import jax
import jax.numpy as jnp
from jax import lax
from jax.experimental import pallas as pl
from jax.experimental.pallas import tpu as pltpu


# ----------------------------------------------------------------------------
# Reference table builder (same math as the torch module) — used only for the
# correctness check in __main__.
# ----------------------------------------------------------------------------
def make_positional_encoding(d_model: int, max_len: int = 5000,
                             dtype=jnp.float32) -> jnp.ndarray:
    position = jnp.arange(max_len, dtype=jnp.float32)[:, None]            # [max_len, 1]
    div_term = jnp.exp(jnp.arange(0, d_model, 2, dtype=jnp.float32)
                       * (-math.log(10000.0) / d_model))                  # [d_model/2]
    pe = jnp.zeros((max_len, 1, d_model), dtype=jnp.float32)
    pe = pe.at[:, 0, 0::2].set(jnp.sin(position * div_term))
    pe = pe.at[:, 0, 1::2].set(jnp.cos(position * div_term))
    return pe.astype(dtype)


# ----------------------------------------------------------------------------
# Kernels
# ----------------------------------------------------------------------------
def _pe_tile(block_seq: int, d_model: int) -> jnp.ndarray:
    """Positional-encoding tile [block_seq, d_model] (f32) for this grid step."""
    row = lax.broadcasted_iota(jnp.int32, (block_seq, d_model), 0).astype(jnp.float32)
    pos = row + (pl.program_id(0) * block_seq).astype(jnp.float32)
    d = lax.broadcasted_iota(jnp.int32, (block_seq, d_model), 1)
    d_even = (d - (d % 2)).astype(jnp.float32)                    # 2 * floor(d / 2)
    inv_freq = jnp.exp(d_even * (-math.log(10000.0) / d_model))   # == torch div_term
    angle = pos * inv_freq
    return jnp.where((d % 2) == 0, jnp.sin(angle), jnp.cos(angle))


def _pe_add_kernel(x_ref, o_ref, *, block_seq: int, d_model: int):
    # x_ref/o_ref: (ts, B, D)
    pe = _pe_tile(block_seq, d_model)[:, None, :]                 # broadcast over batch
    y = x_ref[...].astype(jnp.float32) + pe
    o_ref[...] = y.astype(o_ref.dtype)


def _pe_add_dropout_kernel(x_ref, u_ref, o_ref, *, block_seq: int,
                           d_model: int, p: float):
    # x_ref/u_ref/o_ref: (ts, B, D); u holds uniform [0, 1) randoms.
    pe = _pe_tile(block_seq, d_model)[:, None, :]
    y = x_ref[...].astype(jnp.float32) + pe
    keep = u_ref[...] >= jnp.float32(p)                           # P(keep) = 1 - p
    y = jnp.where(keep, y * (1.0 / (1.0 - p)), 0.0)               # inverted dropout
    o_ref[...] = y.astype(o_ref.dtype)


# ----------------------------------------------------------------------------
# Wrapper
# ----------------------------------------------------------------------------
def _pick_block_seq(seq_len: int, row_bytes: int,
                    target_bytes: int = 2 << 20) -> int:
    """Largest multiple-of-8 divisor of seq_len whose x tile stays <= target."""
    if seq_len * row_bytes <= target_bytes:
        return seq_len
    divs = [d for d in range(8, seq_len + 1, 8) if seq_len % d == 0]
    if not divs:
        return seq_len
    fitting = [d for d in divs if d * row_bytes <= target_bytes]
    return max(fitting) if fitting else min(divs)


def positional_encoding_forward(x: jnp.ndarray, *, p: float = 0.1,
                                training: bool = False,
                                rng_key=None,
                                block_seq: int | None = None,
                                max_len: int = 5000) -> jnp.ndarray:
    """x: [seq_len, batch, d_model] -> dropout(x + pe[:seq_len])."""
    S, B, D = x.shape
    assert S <= max_len, "seq_len exceeds max_len"
    assert D % 2 == 0, "d_model must be even (same requirement as the torch module)"

    if training and p >= 1.0:            # torch: dropout(p=1) zeroes the output
        return jnp.zeros_like(x)

    row_bytes = B * D * x.dtype.itemsize
    ts = block_seq if block_seq is not None else _pick_block_seq(S, row_bytes)
    assert S % ts == 0, "seq_len must be divisible by the seq block size"
    grid = (S // ts,)

    tile_spec = pl.BlockSpec((ts, B, D), lambda i: (i, 0, 0))
    apply_dropout = training and p > 0.0

    if apply_dropout:
        if rng_key is None:
            rng_key = jax.random.PRNGKey(0)
        u = jax.random.uniform(rng_key, (S, B, D), dtype=jnp.float32)
        kernel = functools.partial(_pe_add_dropout_kernel,
                                   block_seq=ts, d_model=D, p=float(p))
        in_specs = [tile_spec, pl.BlockSpec((ts, B, D), lambda i: (i, 0, 0))]
        args = (x, u)
    else:
        kernel = functools.partial(_pe_add_kernel, block_seq=ts, d_model=D)
        in_specs = [tile_spec]
        args = (x,)

    return pl.pallas_call(
        kernel,
        out_shape=jax.ShapeDtypeStruct((S, B, D), x.dtype),
        grid=grid,
        in_specs=in_specs,
        out_specs=pl.BlockSpec((ts, B, D), lambda i: (i, 0, 0)),
        compiler_params=pltpu.CompilerParams(
            dimension_semantics=("parallel",)),   # no carry across seq blocks
    )(*args)


# ----------------------------------------------------------------------------
# Demo / self-check
# ----------------------------------------------------------------------------
if __name__ == "__main__":
    d_model = 32
    seq_len = 8
    batch = 2
    max_len = 5000
    dropout_p = 0.1

    key = jax.random.PRNGKey(0)
    kx, kd = jax.random.split(key)
    x = jax.random.normal(kx, (seq_len, batch, d_model), dtype=jnp.float32)

    # Eval-mode forward (dropout is identity) — exact semantics vs reference.
    out_eval = positional_encoding_forward(x, p=dropout_p, training=False)
    out_eval = jax.block_until_ready(out_eval)
    pe_ref = make_positional_encoding(d_model, max_len=max_len)
    ref = x + pe_ref[:seq_len]
    assert out_eval.shape == (seq_len, batch, d_model)
    assert jnp.allclose(out_eval, ref, atol=1e-5, rtol=1e-5), "mismatch vs reference"

    # Training-mode forward: every element must be either 0 or (x+pe)/(1-p).
    out_train = positional_encoding_forward(x, p=dropout_p, training=True, rng_key=kd)
    out_train = jax.block_until_ready(out_train)
    assert out_train.shape == (seq_len, batch, d_model)
    scaled = ref / (1.0 - dropout_p)
    ok = jnp.isclose(out_train, 0.0, atol=1e-6) | jnp.isclose(out_train, scaled,
                                                              atol=1e-5, rtol=1e-5)
    assert bool(jnp.all(ok)), "dropout output is not {0, (x+pe)/(1-p)}"

    print("KERNEL_OK")
</pallas_src>

<mosaic_0001>
module attributes {stable_mosaic.version = 11 : i64} {
  func.func @_pe_add_kernel(%arg0: i32, %arg1: memref<8x2x32xf32, #tpu.memory_space<vmem>>, %arg2: memref<8x2x32xf32, #tpu.memory_space<vmem>>) attributes {dimension_semantics = [#tpu.dimension_semantics<parallel>], iteration_bounds = array<i64: 1>, scalar_prefetch = 0 : i64, scratch_operands = 0 : i64, tpu.core_type = #tpu.core_type<tc>, window_params = [{transform_indices = @transform_0, window_bounds = array<i64: 8, 2, 32>}, {transform_indices = @transform_1, window_bounds = array<i64: 8, 2, 32>}]} {
    %0 = tpu.iota {dimensions = array<i32: 0>} : vector<8x32xi32>
    %1 = arith.sitofp %0 : vector<8x32xi32> to vector<8x32xf32>
    %c8_i32 = arith.constant 8 : i32
    %2 = arith.muli %arg0, %c8_i32 : i32
    %3 = arith.sitofp %2 : i32 to f32
    %4 = vector.broadcast %3 : f32 to vector<8x32xf32>
    %5 = arith.addf %1, %4 : vector<8x32xf32>
    %6 = tpu.iota {dimensions = array<i32: 1>} : vector<8x32xi32>
    %c2_i32 = arith.constant 2 : i32
    %c0_i32 = arith.constant 0 : i32
    %7 = arith.cmpi eq, %c2_i32, %c0_i32 : i32
    %c1_i32 = arith.constant 1 : i32
    %8 = arith.select %7, %c1_i32, %c2_i32 : i32
    %9 = vector.broadcast %8 : i32 to vector<8x32xi32>
    %10 = arith.remsi %6, %9 : vector<8x32xi32>
    %c0_i32_0 = arith.constant 0 : i32
    %11 = vector.broadcast %c0_i32_0 : i32 to vector<8x32xi32>
    %12 = arith.cmpi ne, %10, %11 : vector<8x32xi32>
    %c0_i32_1 = arith.constant 0 : i32
    %13 = vector.broadcast %c0_i32_1 : i32 to vector<8x32xi32>
    %14 = arith.cmpi slt, %10, %13 : vector<8x32xi32>
    %c0_i32_2 = arith.constant 0 : i32
    %15 = arith.cmpi slt, %8, %c0_i32_2 : i32
    %16 = vector.broadcast %15 : i1 to vector<8x32xi1>
    %17 = vector.broadcast %16 : vector<8x32xi1> to vector<8x32xi1>
    %18 = arith.xori %14, %17 : vector<8x32xi1>
    %19 = arith.andi %18, %12 : vector<8x32xi1>
    %20 = vector.broadcast %8 : i32 to vector<8x32xi32>
    %21 = arith.addi %10, %20 : vector<8x32xi32>
    %22 = arith.select %19, %21, %10 : vector<8x32xi1>, vector<8x32xi32>
    %23 = arith.subi %6, %22 : vector<8x32xi32>
    %24 = arith.sitofp %23 : vector<8x32xi32> to vector<8x32xf32>
    %cst = arith.constant -0.287823141 : f32
    %25 = vector.broadcast %cst : f32 to vector<8x32xf32>
    %26 = arith.mulf %24, %25 : vector<8x32xf32>
    %27 = math.exp %26 : vector<8x32xf32>
    %28 = arith.mulf %5, %27 : vector<8x32xf32>
    %c2_i32_3 = arith.constant 2 : i32
    %c0_i32_4 = arith.constant 0 : i32
    %29 = arith.cmpi eq, %c2_i32_3, %c0_i32_4 : i32
    %c1_i32_5 = arith.constant 1 : i32
    %30 = arith.select %29, %c1_i32_5, %c2_i32_3 : i32
    %31 = vector.broadcast %30 : i32 to vector<8x32xi32>
    %32 = arith.remsi %6, %31 : vector<8x32xi32>
    %c0_i32_6 = arith.constant 0 : i32
    %33 = vector.broadcast %c0_i32_6 : i32 to vector<8x32xi32>
    %34 = arith.cmpi ne, %32, %33 : vector<8x32xi32>
    %c0_i32_7 = arith.constant 0 : i32
    %35 = vector.broadcast %c0_i32_7 : i32 to vector<8x32xi32>
    %36 = arith.cmpi slt, %32, %35 : vector<8x32xi32>
    %c0_i32_8 = arith.constant 0 : i32
    %37 = arith.cmpi slt, %30, %c0_i32_8 : i32
    %38 = vector.broadcast %37 : i1 to vector<8x32xi1>
    %39 = vector.broadcast %38 : vector<8x32xi1> to vector<8x32xi1>
    %40 = arith.xori %36, %39 : vector<8x32xi1>
    %41 = arith.andi %40, %34 : vector<8x32xi1>
    %42 = vector.broadcast %30 : i32 to vector<8x32xi32>
    %43 = arith.addi %32, %42 : vector<8x32xi32>
    %44 = arith.select %41, %43, %32 : vector<8x32xi1>, vector<8x32xi32>
    %c0_i32_9 = arith.constant 0 : i32
    %45 = vector.broadcast %c0_i32_9 : i32 to vector<8x32xi32>
    %46 = arith.cmpi eq, %44, %45 : vector<8x32xi32>
    %47 = math.sin %28 : vector<8x32xf32>
    %48 = math.cos %28 : vector<8x32xf32>
    %49 = arith.select %46, %47, %48 : vector<8x32xi1>, vector<8x32xf32>
    %50 = vector.shape_cast %49 : vector<8x32xf32> to vector<8x1x32xf32>
    %c0 = arith.constant 0 : index
    %c0_10 = arith.constant 0 : index
    %c0_11 = arith.constant 0 : index
    %51 = vector.load %arg1[%c0, %c0_10, %c0_11] : memref<8x2x32xf32, #tpu.memory_space<vmem>>, vector<8x2x32xf32>
    %52 = vector.broadcast %50 : vector<8x1x32xf32> to vector<8x2x32xf32>
    %53 = arith.addf %51, %52 : vector<8x2x32xf32>
    %c0_12 = arith.constant 0 : index
    %c0_13 = arith.constant 0 : index
    %c0_14 = arith.constant 0 : index
    %54 = vector.load %arg2[%c0_12, %c0_13, %c0_14] : memref<8x2x32xf32, #tpu.memory_space<vmem>>, vector<8x2x32xf32>
    tpu.vector_store %arg2[%c0_12, %c0_13, %c0_14], %53 {strides = array<i32>} : memref<8x2x32xf32, #tpu.memory_space<vmem>>, vector<8x2x32xf32>,
    return
  }
  func.func @transform_0(%arg0: i32) -> (i32, i32, i32) {
    %c0_i32 = arith.constant 0 : i32
    %c0_i32_0 = arith.constant 0 : i32
    %c0_i32_1 = arith.constant 0 : i32
    return %arg0, %c0_i32, %c0_i32_0 : i32, i32, i32
  }
  func.func @transform_1(%arg0: i32) -> (i32, i32, i32) {
    %c0_i32 = arith.constant 0 : i32
    %c0_i32_0 = arith.constant 0 : i32
    %c0_i32_1 = arith.constant 0 : i32
    return %arg0, %c0_i32, %c0_i32_0 : i32, i32, i32
  }
}

</mosaic_0001>

<bundles_post_ra>
// kernel: tpu_custom_call.1
= control target key start
LH: loop header
LB: loop body
LE: loop exit
PB: predicated region body
PF: predicated region fallthrough
CT: control target
= control target key end

     0   :  { %6 = vsyncpa [#allocation3], 0  ;;  %s561_s0 = inlined_call_operand.hbm [shape: f32[8,2,32], index: 0, kind: input, shape index: {}]   ;;  %s562_s1 = inlined_call_operand.hbm [shape: f32[8,2,32], index: 1, kind: output, shape index: {}]  }
   0x1   :  { %7 = vsyncpa [#allocation4], 0  ;;  %s468_s6 = smov [#allocation2]   ;;  %s420_s10 = scalar_lea.hbm %s561_s0, 256 }
   0x2   :  { %s13_s7 = sshll.u32 %s468_s6, 4  ;;  %p421_p0 = scmp.ne.s32.totalorder %s561_s0, %s420_s10  ;;  %s14_s7 = int_to_ptr.vmem [resolvable:$true] %s13_s7 }
   0x3   :  { %p424_p1 = scmp.lt.u32.totalorder %s420_s10, %s561_s0 }
   0x5   :  { %p426_p2 = pnand %p424_p1, %p421_p0 }
   0x7   :  { %429 = shalt.err (!%p426_p2)
}
   0x8   :  { %s430_s15 = scalar_lea.vmem %s14_s7, 256  ;;  %p435_p4 = scmp.lt.s32.totalorder %s14_s7, %s14_s7 }
   0x9   :  { %p431_p3 = scmp.ne.s32.totalorder %s14_s7, %s430_s15  ;;  %p436_p5 = scmp.lt.s32.totalorder %s430_s15, %s430_s15 }
   0xb   :  { %p437_p6 = por %p436_p5, %p435_p4 }
   0xd   :  { %p438_p7 = pnand %p437_p6, %p431_p3 }
   0xf   :  { %441 = shalt.err (!%p438_p7)
}
  0x10   :  { %s469_s16 = smov 32   ;;  %s470_s17 = smov 2  }
  0x11   :  { %19 = dma.hbm_to_vmem [thread:$0]  %s561_s0, 256, %s14_s7, [#allocation3], %s469_s16, %s469_s16, %s470_s17  }
  0x12   :  { %464 = dma.done.wait [#allocation3], 256  }
  0x13   :  { %465 = vsyncadd [#allocation3], 4294967040  ;;  %v23_v0 = vlaneseq  ;;  %v471_v22 = vmov 683565275   ;;  %v472_v24 = vmov 2475754826  }
  0x14   :  { %v473_v26 = vmov 2131351028   ;;  %v474_v28 = vmov 2102212464   ;;  %v475_v30 = vmov 920167782  }
  0x15   :  { %v504_v1 = vand.u32 127, %v23_v0  ;;  %v510_v7 = vshrl.u32 %v23_v0, 7  ;;  %v476_v37 = vmov 1326507024   ;;  %s478_s0 = smov [#allocation5]  }
  0x16   :  { %s379_s20 = sshll.u32 %s478_s0, 4  ;;  %s380_s20 = int_to_ptr.vmem [resolvable:$true] %s379_s20 }
  0x17   :  { %v36_v2 = vand.u32 1, %v504_v1  ;;  %v25_v8 = vcvt.s32.f32 %v510_v7  ;;  %s442_s21 = scalar_lea.vmem %s380_s20, 256  ;;  %p447_p9 = scmp.lt.s32.totalorder %s380_s20, %s380_s20 }
  0x18   :  { %p443_p8 = scmp.ne.s32.totalorder %s380_s20, %s442_s21  ;;  %p448_p10 = scmp.lt.s32.totalorder %s442_s21, %s442_s21 }
  0x19   :  { %v44_v3 = vsub.s32 %v504_v1, %v36_v2 }
  0x1a   :  { %p449_p11 = por %p448_p10, %p447_p9 }
  0x1b   :  { %v45_v4 = vcvt.s32.f32 %v44_v3 }
  0x1c   :  { %p450_p12 = pnand %p449_p11, %p443_p8 }
  0x1d   :  { %v46_v5 = vmul.f32 -0.28782314, %v45_v4 }
  0x1f   :  { %v47_v6 = vmul.f32 1.442695, %v46_v5 }
  0x21   :  { %414 = vpow2.f32 %v47_v6 }
  0x2b   :  { %v415_v9 = vpop.eup %414 }
  0x2c   :  { %v513_v10 = vmul.f32 %v415_v9, %v25_v8 }
  0x2e   :  { %v54_v11 = vand.u32 2139095040, %v513_v10  ;;  %v51_v13 = vand.u32 2147483647, %v513_v10  ;;  %vm53_vm7 = vcmp.lt.s32.totalorder %v513_v10, 0  ;;  %vm143_vm15 = vweird.f32 %v513_v10 }
  0x30   :  { %v55_v12 = vshrl.u32 %v54_v11, 23  ;;  %v58_v16 = vand.u32 8388607, %v51_v13  ;;  %vm52_vm8 = vcmp.le.f32.partialorder %v51_v13, 0.7853982 }
  0x32   :  { %v391_v14 = vadd.s32 4294967169, %v55_v12  ;;  %v59_v19 = vor.u32 8388608, %v58_v16 }
  0x34   :  { %v61_v15 = vadd.s32 1, %v391_v14  ;;  %v99_v39 = vshll.u32 %v59_v19, 8 }
  0x36   :  { %vm62_vm0 = vcmp.gt.s32.totalorder %v61_v15, 0 }
  0x37   :  { %v63_v17 = vsel %vm62_vm0, %v61_v15, 0  ;;  %vm50_vm0 = vcmp.eq.s32.totalorder %v36_v2, 0 }
  0x38   :  { %v65_v18 = vand.u32 31, %v63_v17  ;;  %v64_v20 = vshrl.u32 %v63_v17, 5 }
  0x3a   :  { %v66_v21 = vsub.s32 32, %v65_v18  ;;  %v68_v23 = vshll.u32 %v471_v22, %v65_v18  ;;  %v71_v25 = vshll.u32 %v472_v24, %v65_v18  ;;  %v74_v27 = vshll.u32 %v473_v26, %v65_v18 }
  0x3b   :  { %v77_v29 = vshll.u32 %v474_v28, %v65_v18  ;;  %v80_v31 = vshll.u32 %v475_v30, %v65_v18  ;;  %vm83_vm1 = vcmp.lt.s32.totalorder %v64_v20, 1  ;;  %vm86_vm2 = vcmp.lt.s32.totalorder %v64_v20, 4 }
  0x3c   :  { %v67_v32 = vshrl.u32 %v471_v22, %v66_v21  ;;  %v69_v33 = vshrl.u32 %v472_v24, %v66_v21  ;;  %v72_v34 = vshrl.u32 %v473_v26, %v66_v21  ;;  %v75_v35 = vshrl.u32 %v474_v28, %v66_v21 }
  0x3d   :  { %v78_v36 = vshrl.u32 %v475_v30, %v66_v21  ;;  %v81_v38 = vshrl.u32 %v476_v37, %v66_v21  ;;  %vm84_vm3 = vcmp.lt.s32.totalorder %v64_v20, 2  ;;  %vm85_vm4 = vcmp.lt.s32.totalorder %v64_v20, 3 }
  0x3e   :  { %v70_v40 = vor.u32 %v69_v33, %v68_v23  ;;  %v73_v41 = vor.u32 %v72_v34, %v71_v25  ;;  %v76_v42 = vor.u32 %v75_v35, %v74_v27 }
  0x3f   :  { %v79_v43 = vor.u32 %v78_v36, %v77_v29  ;;  %v82_v44 = vor.u32 %v81_v38, %v80_v31  ;;  %v477_v36 = vmov 1966171168  }
  0x40   :  { %v87_v45 = vsel %vm83_vm1, %v67_v32, %v70_v40  ;;  %v88_v46 = vsel %vm86_vm2, %v76_v42, 2102212464  ;;  %v91_v47 = vsel %vm83_vm1, %v70_v40, %v73_v41  ;;  %v95_v48 = vsel %vm83_vm1, %v73_v41, %v76_v42 }
  0x41   :  { %v89_v49 = vsel %vm85_vm4, %v73_v41, %v88_v46  ;;  %v92_v50 = vsel %vm86_vm2, %v79_v43, 920167782  ;;  %v96_v51 = vsel %vm86_vm2, %v82_v44, 1326507024  ;;  %v262_v37 = vunpack.c.l.s4 %v477_v36 }
  0x42   :  { %v93_v52 = vsel %vm85_vm4, %v76_v42, %v92_v50  ;;  %v97_v53 = vsel %vm85_vm4, %v79_v43, %v96_v51  ;;  %v90_v54 = vsel %vm84_vm3, %v87_v45, %v89_v49  ;;  %vm365_vm1 = vcmask 254976  }
  0x43   :  { %v94_v55 = vsel %vm84_vm3, %v91_v47, %v93_v52  ;;  %v98_v56 = vsel %vm84_vm3, %v95_v48, %v97_v53  ;;  %v106_v61 = vmul.u32 %v99_v39, %v90_v54  ;;  %v319_v53 = vsub.s32 0, %v510_v7 }
  0x44   :  { %v519_v57 = vmul.u32.u64.low %v99_v39, %v98_v56  ;;  %v520_v58 = vmul.u32.u64.high %v99_v39, %v98_v56, %v519_v57  ;;  %v522_v59 = vmul.u32.u64.low %v99_v39, %v94_v55  ;;  %v523_v60 = vmul.u32.u64.high %v99_v39, %v94_v55, %v522_v59 }
  0x45   :  { %v263_v39 = vunpack.c.0.s8 %v262_v37  ;;  %v309_v57 = vld [vmem:[#allocation2] sm:$0x3] }
  0x46   :  { %vm108_vm5 = vc.u32 %v520_v58, %v522_v59  ;;  %v109_v62 = vadd.s32 1, %v523_v60  ;;  %v107_v14 = vadd.s32 %v522_v59, %v520_v58 }
  0x47   :  { %v266_v46 = vsub.s32 %v263_v39, %v510_v7 }
  0x48   :  { %v110_v63 = vsel %vm108_vm5, %v109_v62, %v523_v60  ;;  %v310_v60 = vld [vmem:[#allocation2 + $0x2] sm:$0x3] }
  0x49   :  { %v111_v0 = vadd.s32 %v110_v63, %v106_v61  ;;  %v311_v61 = vld [vmem:[#allocation2 + $0x4] sm:$0x3] }
  0x4b   :  { %v112_v3 = vadd.s32 536870912, %v111_v0 }
  0x4d   :  { %v113_v4 = vshrl.u32 %v112_v3, 30 }
  0x4f   :  { %v114_v5 = vshll.u32 %v113_v4, 30  ;;  %v137_v26 = vsub.s32 4, %v113_v4 }
  0x51   :  { %v115_v6 = vsub.s32 %v111_v0, %v114_v5  ;;  %v138_v29 = vsel %vm53_vm7, %v137_v26, %v113_v4  ;;  %v313_v5 = vld [vmem:[#allocation2 + $0x8] sm:$0x3] }
  0x52   :  { %v140_v32 = vsel %vm52_vm8, 0, %v138_v29 }
  0x53   :  { %v117_v8 = vsub.s32 0, %v115_v6  ;;  %v144_v33 = vadd.s32 3, %v140_v32  ;;  %v248_v35 = vand.u32 3, %v140_v32 }
  0x55   :  { %v392_v9 = vmin.u32 %v117_v8, %v115_v6  ;;  %v145_v34 = vand.u32 3, %v144_v33  ;;  %vm253_vm10 = vcmp.eq.s32.totalorder %v248_v35, 2  ;;  %vm250_vm12 = vcmp.eq.s32.totalorder %v248_v35, 0 }
  0x56   :  { %vm249_vm14 = vcmp.lt.s32.totalorder %v248_v35, 2 }
  0x57   :  { %v119_v11 = vclz %v392_v9  ;;  %vm150_vm9 = vcmp.eq.s32.totalorder %v145_v34, 2  ;;  %vm147_vm11 = vcmp.eq.s32.totalorder %v145_v34, 0  ;;  %vm146_vm13 = vcmp.lt.s32.totalorder %v145_v34, 2 }
  0x59   :  { %v393_v12 = vadd.s32 4294967294, %v119_v11 }
  0x5b   :  { %vm394_vm6 = vcmp.lt.s32.totalorder %v393_v12, 0 }
  0x5c   :  { %v122_v15 = vsel %vm394_vm6, 0, %v393_v12 }
  0x5d   :  { %v123_v16 = vsub.s32 32, %v122_v15  ;;  %v124_v17 = vshll.u32 %v115_v6, %v122_v15  ;;  %v127_v18 = vsub.s32 4294967266, %v122_v15  ;;  %v312_v6 = vld [vmem:[#allocation2 + $0x6] sm:$0x3]  ;;  %v314_v15 = vld [vmem:[#allocation2 + $0xa] sm:$0x3] }
  0x5f   :  { %v125_v19 = vshrl.u32 %v107_v14, %v123_v16  ;;  %v128_v20 = vadd.s32 127, %v127_v18  ;;  %v315_v16 = vld [vmem:[#allocation2 + $0xc] sm:$0x3] }
  0x61   :  { %v126_v21 = vor.u32 %v125_v19, %v124_v17  ;;  %v129_v22 = vshll.u32 %v128_v20, 23 }
  0x63   :  { %v130_v23 = vor.u32 4788187, %v129_v22  ;;  %v133_v24 = vcvt.s32.f32 %v126_v21  ;;  %v316_v22 = vld [vmem:[#allocation2 + $0xe] sm:$0x3] }
  0x65   :  { %v131_v25 = vand.u32 2147483647, %v130_v23 }
  0x67   :  { %v134_v27 = vmul.f32 %v133_v24, %v131_v25 }
  0x69   :  { %v135_v28 = vxor.u32 2147483648, %v134_v27 }
  0x6b   :  { %v136_v30 = vsel %vm53_vm7, %v135_v28, %v134_v27 }
  0x6c   :  { %v139_v31 = vsel %vm52_vm8, %v513_v10, %v136_v30 }
  0x6d   :  { %416 = vcosq.f32 %v139_v31 }
  0x6e   :  { %418 = vsinq.f32 %v139_v31 }
  0x77   :  { %v417_v38 = vpop.eup %416 }
  0x78   :  { %v419_v40 = vpop.eup %418  ;;  %v151_v13 = vxor.u32 2147483648, %v417_v38 }
  0x79   :  { %v148_v41 = vxor.u32 2147483648, %v419_v40 }
  0x7a   :  { %v152_v42 = vsel %vm150_vm9, %v151_v13, %v419_v40  ;;  %v255_v43 = vsel %vm253_vm10, %v151_v13, %v419_v40 }
  0x7b   :  { %v149_v44 = vsel %vm147_vm11, %v417_v38, %v148_v41  ;;  %v252_v45 = vsel %vm250_vm12, %v417_v38, %v148_v41 }
  0x7c   :  { %v153_v47 = vsel %vm146_vm13, %v149_v44, %v152_v42  ;;  %v256_v48 = vsel %vm249_vm14, %v252_v45, %v255_v43 }
  0x7d   :  { %v154_v49 = vsel %vm143_vm15, nan, %v153_v47  ;;  %v257_v50 = vsel %vm143_vm15, nan, %v256_v48 }
  0x7e   :  { %v258_v51 = vsel %vm50_vm0, %v154_v49, %v257_v50 }
  0x7f   :  { %v267_v52 = vrot.slane %v258_v51, %v266_v46  ;;  %v260_v54 = vcombine.high %v258_v51, %v258_v51 }
  0x81   :  { %v283_v55 = vrot.slane %v267_v52, %v266_v46  ;;  %v275_v10 = vcombine.high %v267_v52, %v267_v52  ;;  %v274_v56 = vrot.slane %v260_v54, %v266_v46 }
  0x83   :  { %v320_v58 = vrot.slane %v283_v55, %v319_v53  ;;  %v297_v1 = vrot.slane %v275_v10, %v266_v46  ;;  %v305_v2 = vcombine.high %v283_v55, %v283_v55  ;;  %v290_v59 = vrot.slane %v274_v56, %v266_v46 }
  0x84   :  { %v276_v62 = vcombine.high %v274_v56, %v274_v56 }
  0x85   :  { %v357_v63 = vadd.f32 %v320_v58, %v309_v57  ;;  %v324_v0 = vrot.slane %v297_v1, %v319_v53  ;;  %v328_v3 = vrot.slane %v305_v2, %v319_v53  ;;  %v307_v4 = vcombine.high %v297_v1, %v297_v1 }
  0x86   :  { %v336_v7 = vrot.slane %v290_v59, %v319_v53  ;;  %v304_v8 = vrot.slane %v276_v62, %v266_v46  ;;  %v306_v9 = vcombine.high %v290_v59, %v290_v59 }
  0x87   :  { %366 = vst.msk [vmem:[#allocation5] sm:$0x3] %vm365_vm1, %v357_v63  ;;  %v358_v11 = vadd.f32 %v324_v0, %v310_v60  ;;  %v359_v12 = vadd.f32 %v328_v3, %v311_v61  ;;  %v332_v14 = vrot.slane %v307_v4, %v319_v53 }
  0x88   :  { %v361_v17 = vadd.f32 %v336_v7, %v313_v5  ;;  %v340_v18 = vrot.slane %v304_v8, %v319_v53  ;;  %v344_v19 = vrot.slane %v306_v9, %v319_v53  ;;  %v308_v20 = vcombine.high %v304_v8, %v304_v8 }
  0x89   :  { %367 = vst.msk [vmem:[#allocation5 + $0x2] sm:$0x3] %vm365_vm1, %v358_v11  ;;  %368 = vst.msk [vmem:[#allocation5 + $0x4] sm:$0x3] %vm365_vm1, %v359_v12  ;;  %v360_v21 = vadd.f32 %v332_v14, %v312_v6 }
  0x8a   :  { %370 = vst.msk [vmem:[#allocation5 + $0x8] sm:$0x3] %vm365_vm1, %v361_v17  ;;  %v362_v23 = vadd.f32 %v340_v18, %v314_v15  ;;  %v363_v24 = vadd.f32 %v344_v19, %v315_v16  ;;  %v348_v25 = vrot.slane %v308_v20, %v319_v53 }
  0x8b   :  { %369 = vst.msk [vmem:[#allocation5 + $0x6] sm:$0x3] %vm365_vm1, %v360_v21 }
  0x8c   :  { %371 = vst.msk [vmem:[#allocation5 + $0xa] sm:$0x3] %vm365_vm1, %v362_v23  ;;  %372 = vst.msk [vmem:[#allocation5 + $0xc] sm:$0x3] %vm365_vm1, %v363_v24  ;;  %v364_v26 = vadd.f32 %v348_v25, %v316_v22 }
  0x8e   :  { %373 = vst.msk [vmem:[#allocation5 + $0xe] sm:$0x3] %vm365_vm1, %v364_v26 }
  0x8f   :  { %453 = shalt.err (!%p450_p12)
}
  0x90   :  { %s454_s24 = scalar_lea.hbm %s562_s1, 256 }
  0x91   :  { %p455_p13 = scmp.ne.s32.totalorder %s562_s1, %s454_s24  ;;  %p458_p0 = scmp.lt.u32.totalorder %s454_s24, %s562_s1 }
  0x93   :  { %p460_p1 = pnand %p458_p0, %p455_p13 }
  0x95   :  { %463 = shalt.err (!%p460_p1)
}
  0x96   :  { %385 = dma.vmem_to_hbm [thread:$0]  %s380_s20, 256, %s562_s1, [#allocation4], %s469_s16, %s469_s16, %s470_s17  }
  0x97   :  { %466 = dma.done.wait [#allocation4], 256  }
  0x98   :  { %467 = vsyncadd [#allocation4], 4294967040 }
  0x99   :  { %389 = vsyncpa [#allocation3], 1 }
  0x9a   :  { %390 = vsyncpa [#allocation4], 1 }

</bundles_post_ra>
